<compile_context>
chip_gen: v6e
topology: v6e:2x2x1
jax: 0.10.0
libtpu: 0.0.40
codegen_flags: <defaults>
</compile_context>

<pallas_src>
import functools
import math

import jax
import jax.numpy as jnp
from jax.experimental import pallas as pl
from jax.experimental.pallas import tpu as pltpu


def make_divisible(x, divisible_by=8):
    return int(math.ceil(x * 1.0 / divisible_by) * divisible_by)


def se_kernel(x_ref, w1_ref, b1_ref, w2_ref, b2_ref, o_ref, *, inv_hw):
    # x_ref block: (TB, C, HW_pad) for the current batch-block.
    tb = x_ref.shape[0]

    @pl.loop(0, tb)
    def _(b):
        # Squeeze: per-channel mean over the spatial (lane) axis, accumulated
        # in f32 without materializing a full f32 copy of the native slab.
        y = jnp.sum(x_ref[b], axis=-1, keepdims=True,
                    dtype=jnp.float32) * inv_hw                       # (C, 1)

        # Excitation (tiny): fc1 -> ReLU -> fc2 -> h_sigmoid, kept as column
        # vectors so channels stay in sublanes (no transpose for the final
        # broadcast over the HW lanes).
        h = jnp.dot(w1_ref[...], y,
                    preferred_element_type=jnp.float32) + b1_ref[...]  # (Ch, 1)
        h = jnp.maximum(h, 0.0)
        s = jnp.dot(w2_ref[...], h,
                    preferred_element_type=jnp.float32) + b2_ref[...]  # (C, 1)
        scale = jnp.clip(s + 3.0, 0.0, 6.0) * (1.0 / 6.0)              # h_sigmoid

        # Scale-apply in the native dtype: (C, 1) broadcasts over HW lanes.
        o_ref[b] = (x_ref[b] * scale.astype(o_ref.dtype)).astype(o_ref.dtype)


def se_layer_forward(x, w1, b1, w2, b2, *, target_block_bytes=4 << 20):
    """Pallas SELayer.forward.

    x: (B, C, H, W); w1: (Ch, C); b1: (Ch,); w2: (C, Ch); b2: (C,).
    Returns (B, C, H, W) = x * h_sigmoid(fc2(relu(fc1(avgpool(x))))).
    """
    B, C, H, W = x.shape
    HW = H * W
    Ch = w1.shape[0]

    # Lane-dense spatial axis: pad H*W up to a multiple of 128 so stores are
    # full-lane (unmasked).  Pad zeros don't affect the mean (we divide by the
    # true HW) and are sliced off afterwards.
    HW_pad = ((HW + 127) // 128) * 128
    xf = x.reshape(B, C, HW)
    if HW_pad != HW:
        xf = jnp.pad(xf, ((0, 0), (0, 0), (0, HW_pad - HW)))

    # Batch-block size: biggest divisor of B whose slab fits the per-block
    # byte budget, but keep >= 2 grid steps so both v7x TensorCores get work.
    per_batch_bytes = C * HW_pad * x.dtype.itemsize
    tb_cap = max(1, target_block_bytes // per_batch_bytes)
    if B >= 2:
        tb_cap = min(tb_cap, B // 2)
    TB = max(d for d in range(1, B + 1) if B % d == 0 and d <= tb_cap)
    grid = (B // TB,)

    w1f = w1.astype(jnp.float32)
    w2f = w2.astype(jnp.float32)
    b1c = b1.reshape(Ch, 1).astype(jnp.float32)
    b2c = b2.reshape(C, 1).astype(jnp.float32)

    # Scoped-VMEM budget: in + out blocks double-buffered (~4x block bytes)
    # plus the resident FC weights, clamped with headroom under v7x's 64 MiB
    # physical VMEM (v5e/v6e have 128 MiB physical, so this is safe there too).
    block_bytes = TB * per_batch_bytes
    weight_bytes = 4 * (Ch * C + Ch + C * Ch + C)
    vmem_limit = 4 * block_bytes + 2 * weight_bytes + (4 << 20)
    vmem_limit = int(min(max(vmem_limit, 16 << 20), 48 << 20))

    out = pl.pallas_call(
        functools.partial(se_kernel, inv_hw=1.0 / HW),
        out_shape=jax.ShapeDtypeStruct((B, C, HW_pad), x.dtype),
        grid=grid,
        in_specs=[
            pl.BlockSpec((TB, C, HW_pad), lambda i: (i, 0, 0)),  # x batch-block
            pl.BlockSpec((Ch, C), lambda i: (0, 0)),             # fc1 weight (resident)
            pl.BlockSpec((Ch, 1), lambda i: (0, 0)),             # fc1 bias
            pl.BlockSpec((C, Ch), lambda i: (0, 0)),             # fc2 weight (resident)
            pl.BlockSpec((C, 1), lambda i: (0, 0)),              # fc2 bias
        ],
        out_specs=pl.BlockSpec((TB, C, HW_pad), lambda i: (i, 0, 0)),
        compiler_params=pltpu.CompilerParams(
            dimension_semantics=("parallel",),
            vmem_limit_bytes=vmem_limit,
        ),
    )(xf, w1f, b1c, w2f, b2c)

    if HW_pad != HW:
        out = out[:, :, :HW]
    return out.reshape(B, C, H, W)


def se_layer_ref(x, w1, b1, w2, b2):
    """Pure-JAX reference (mirrors the PyTorch module)."""
    y = jnp.mean(x.astype(jnp.float32), axis=(2, 3))          # (B, C)
    h = jnp.maximum(y @ w1.T + b1, 0.0)
    s = h @ w2.T + b2
    scale = jnp.clip(s + 3.0, 0.0, 6.0) / 6.0
    return (x * scale[:, :, None, None]).astype(x.dtype)


if __name__ == "__main__":
    key = jax.random.PRNGKey(0)
    B, C, H, W = 2, 4, 16, 16
    reduction = 4
    Ch = make_divisible(C // reduction, 8)                    # = 8

    kx, k1, k2, k3, k4 = jax.random.split(key, 5)
    x = jax.random.normal(kx, (B, C, H, W), dtype=jnp.float32)
    w1 = jax.random.normal(k1, (Ch, C), dtype=jnp.float32) * 0.3
    b1 = jax.random.normal(k2, (Ch,), dtype=jnp.float32) * 0.1
    w2 = jax.random.normal(k3, (C, Ch), dtype=jnp.float32) * 0.3
    b2 = jax.random.normal(k4, (C,), dtype=jnp.float32) * 0.1

    out = jax.block_until_ready(se_layer_forward(x, w1, b1, w2, b2))
    ref = jax.block_until_ready(se_layer_ref(x, w1, b1, w2, b2))

    assert out.shape == (B, C, H, W)
    assert jnp.allclose(out, ref, rtol=1e-5, atol=1e-5), (
        f"max abs err {float(jnp.max(jnp.abs(out - ref)))}")
    print("KERNEL_OK")
</pallas_src>

<mosaic_0001>
module attributes {stable_mosaic.version = 11 : i64} {
  func.func @se_kernel(%arg0: i32, %arg1: memref<1x4x256xf32, #tpu.memory_space<vmem>>, %arg2: memref<8x4xf32, #tpu.memory_space<vmem>>, %arg3: memref<8x1xf32, #tpu.memory_space<vmem>>, %arg4: memref<4x8xf32, #tpu.memory_space<vmem>>, %arg5: memref<4x1xf32, #tpu.memory_space<vmem>>, %arg6: memref<1x4x256xf32, #tpu.memory_space<vmem>>) attributes {dimension_semantics = [#tpu.dimension_semantics<parallel>], iteration_bounds = array<i64: 2>, scalar_prefetch = 0 : i64, scratch_operands = 0 : i64, tpu.core_type = #tpu.core_type<tc>, window_params = [{transform_indices = @transform_0, window_bounds = array<i64: 1, 4, 256>}, {pipeline_mode = #tpu.pipeline_mode<synchronous>, transform_indices = @transform_1, window_bounds = array<i64: 8, 4>}, {pipeline_mode = #tpu.pipeline_mode<synchronous>, transform_indices = @transform_2, window_bounds = array<i64: 8, 1>}, {pipeline_mode = #tpu.pipeline_mode<synchronous>, transform_indices = @transform_3, window_bounds = array<i64: 4, 8>}, {pipeline_mode = #tpu.pipeline_mode<synchronous>, transform_indices = @transform_4, window_bounds = array<i64: 4, 1>}, {transform_indices = @transform_5, window_bounds = array<i64: 1, 4, 256>}]} {
    %c0_i32 = arith.constant 0 : i32
    %c1_i32 = arith.constant 1 : i32
    %0 = arith.muli %c0_i32, %c1_i32 : i32
    %c0_i32_0 = arith.constant 0 : i32
    %1 = arith.addi %c0_i32_0, %0 : i32
    %2 = arith.index_cast %1 : i32 to index
    %c0 = arith.constant 0 : index
    %c0_1 = arith.constant 0 : index
    %3 = vector.load %arg1[%2, %c0, %c0_1] : memref<1x4x256xf32, #tpu.memory_space<vmem>>, vector<1x4x256xf32>
    %4 = vector.shape_cast %3 : vector<1x4x256xf32> to vector<4x256xf32>
    %cst = arith.constant dense<0.000000e+00> : vector<4xf32>
    %5 = vector.multi_reduction <add>, %4, %cst [1] : vector<4x256xf32> to vector<4xf32>
    %6 = vector.shape_cast %5 : vector<4xf32> to vector<4x1xf32>
    %cst_2 = arith.constant 3.906250e-03 : f32
    %7 = vector.broadcast %cst_2 : f32 to vector<4x1xf32>
    %8 = arith.mulf %6, %7 : vector<4x1xf32>
    %c0_3 = arith.constant 0 : index
    %c0_4 = arith.constant 0 : index
    %9 = vector.load %arg2[%c0_3, %c0_4] : memref<8x4xf32, #tpu.memory_space<vmem>>, vector<8x4xf32>
    %cst_5 = arith.constant dense<0.000000e+00> : vector<8x1xf32>
    %10 = tpu.matmul %9, %8, %cst_5 {dimension_numbers = #tpu.dot_dimension_numbers<[1], [0], [0], [1], [0, 0, 1, 1], [], []>} : vector<8x4xf32>, vector<4x1xf32>, vector<8x1xf32> -> vector<8x1xf32>
    %c0_6 = arith.constant 0 : index
    %c0_7 = arith.constant 0 : index
    %11 = vector.load %arg3[%c0_6, %c0_7] : memref<8x1xf32, #tpu.memory_space<vmem>>, vector<8x1xf32>
    %12 = arith.addf %10, %11 : vector<8x1xf32>
    %cst_8 = arith.constant 0.000000e+00 : f32
    %13 = vector.broadcast %cst_8 : f32 to vector<8x1xf32>
    %14 = arith.maximumf %12, %13 : vector<8x1xf32>
    %c0_9 = arith.constant 0 : index
    %c0_10 = arith.constant 0 : index
    %15 = vector.load %arg4[%c0_9, %c0_10] : memref<4x8xf32, #tpu.memory_space<vmem>>, vector<4x8xf32>
    %cst_11 = arith.constant dense<0.000000e+00> : vector<4x1xf32>
    %16 = tpu.matmul %15, %14, %cst_11 {dimension_numbers = #tpu.dot_dimension_numbers<[1], [0], [0], [1], [0, 0, 1, 1], [], []>} : vector<4x8xf32>, vector<8x1xf32>, vector<4x1xf32> -> vector<4x1xf32>
    %c0_12 = arith.constant 0 : index
    %c0_13 = arith.constant 0 : index
    %17 = vector.load %arg5[%c0_12, %c0_13] : memref<4x1xf32, #tpu.memory_space<vmem>>, vector<4x1xf32>
    %18 = arith.addf %16, %17 : vector<4x1xf32>
    %cst_14 = arith.constant 3.000000e+00 : f32
    %19 = vector.broadcast %cst_14 : f32 to vector<4x1xf32>
    %20 = arith.addf %18, %19 : vector<4x1xf32>
    %cst_15 = arith.constant 0.000000e+00 : f32
    %cst_16 = arith.constant 6.000000e+00 : f32
    %21 = vector.broadcast %cst_15 : f32 to vector<4x1xf32>
    %22 = arith.maximumf %21, %20 : vector<4x1xf32>
    %23 = vector.broadcast %cst_16 : f32 to vector<4x1xf32>
    %24 = arith.minimumf %23, %22 : vector<4x1xf32>
    %cst_17 = arith.constant 0.166666672 : f32
    %25 = vector.broadcast %cst_17 : f32 to vector<4x1xf32>
    %26 = arith.mulf %24, %25 : vector<4x1xf32>
    %27 = arith.index_cast %1 : i32 to index
    %c0_18 = arith.constant 0 : index
    %c0_19 = arith.constant 0 : index
    %28 = vector.load %arg1[%27, %c0_18, %c0_19] : memref<1x4x256xf32, #tpu.memory_space<vmem>>, vector<1x4x256xf32>
    %29 = vector.shape_cast %28 : vector<1x4x256xf32> to vector<4x256xf32>
    %30 = vector.broadcast %26 : vector<4x1xf32> to vector<4x256xf32>
    %31 = arith.mulf %29, %30 : vector<4x256xf32>
    %32 = arith.index_cast %1 : i32 to index
    %c0_20 = arith.constant 0 : index
    %c0_21 = arith.constant 0 : index
    %33 = vector.load %arg6[%32, %c0_20, %c0_21] : memref<1x4x256xf32, #tpu.memory_space<vmem>>, vector<1x4x256xf32>
    %34 = vector.shape_cast %33 : vector<1x4x256xf32> to vector<4x256xf32>
    %35 = vector.shape_cast %31 : vector<4x256xf32> to vector<1x4x256xf32>
    tpu.vector_store %arg6[%32, %c0_20, %c0_21], %35 {strides = array<i32>} : memref<1x4x256xf32, #tpu.memory_space<vmem>>, vector<1x4x256xf32>,
    %c1_i32_22 = arith.constant 1 : i32
    return
  }
  func.func @transform_0(%arg0: i32) -> (i32, i32, i32) {
    %c0_i32 = arith.constant 0 : i32
    %c0_i32_0 = arith.constant 0 : i32
    %c0_i32_1 = arith.constant 0 : i32
    return %arg0, %c0_i32, %c0_i32_0 : i32, i32, i32
  }
  func.func @transform_1(%arg0: i32) -> (i32, i32) {
    %c0_i32 = arith.constant 0 : i32
    %c0_i32_0 = arith.constant 0 : i32
    %c0_i32_1 = arith.constant 0 : i32
    return %c0_i32, %c0_i32_0 : i32, i32
  }
  func.func @transform_2(%arg0: i32) -> (i32, i32) {
    %c0_i32 = arith.constant 0 : i32
    %c0_i32_0 = arith.constant 0 : i32
    %c0_i32_1 = arith.constant 0 : i32
    return %c0_i32, %c0_i32_0 : i32, i32
  }
  func.func @transform_3(%arg0: i32) -> (i32, i32) {
    %c0_i32 = arith.constant 0 : i32
    %c0_i32_0 = arith.constant 0 : i32
    %c0_i32_1 = arith.constant 0 : i32
    return %c0_i32, %c0_i32_0 : i32, i32
  }
  func.func @transform_4(%arg0: i32) -> (i32, i32) {
    %c0_i32 = arith.constant 0 : i32
    %c0_i32_0 = arith.constant 0 : i32
    %c0_i32_1 = arith.constant 0 : i32
    return %c0_i32, %c0_i32_0 : i32, i32
  }
  func.func @transform_5(%arg0: i32) -> (i32, i32, i32) {
    %c0_i32 = arith.constant 0 : i32
    %c0_i32_0 = arith.constant 0 : i32
    %c0_i32_1 = arith.constant 0 : i32
    return %arg0, %c0_i32, %c0_i32_0 : i32, i32, i32
  }
}

</mosaic_0001>

<bundles_post_ra>
// kernel: tpu_custom_call.1
= control target key start
LH: loop header
LB: loop body
LE: loop exit
PB: predicated region body
PF: predicated region fallthrough
CT: control target
= control target key end

     0   :  { %10 = vsyncpa [#allocation3], 0  ;;  %s757_s0 = inlined_call_operand.vmem [shape: f32[2,4,256], index: 0, kind: input, shape index: {}]   ;;  %s758_s1 = inlined_call_operand.vmem [shape: f32[8,4], index: 1, kind: input, shape index: {}]   ;;  %s759_s2 = inlined_call_operand.vmem [shape: f32[8,1], index: 2, kind: input, shape index: {}]   ;;  %s760_s3 = inlined_call_operand.vmem [shape: f32[4,8], index: 3, kind: input, shape index: {}]   ;;  %s761_s4 = inlined_call_operand.vmem [shape: f32[4,1], index: 4, kind: input, shape index: {}]   ;;  %s762_s5 = inlined_call_operand.hbm [shape: f32[2,4,256], index: 5, kind: output, shape index: {}]  }
   0x1   :  { %12 = vsyncpa [#allocation3 + $0x1], 0  ;;  %s655_s18 = smov 0   ;;  %s657_s19 = smov 0  }
   0x2   :  { %s659_s20 = smov 0   ;;  %s661_s21 = smov 0  }
   0x3 LB: > { %s676_s22 = sadd.s32 4294967295, %s618_s21   ;;  %s482_s23 = sadd.s32 4294967294, %s618_s21   ;;  %s618_s21 = sphi %s661_s21, %s768_s21   ;;  %s614_s20 = sphi %s659_s20, %s767_s20   ;;  %s610_s19 = sphi %s657_s19, %s766_s19   ;;  %s606_s18 = sphi %s655_s18, %s765_s18  }
   0x4   : > { %s680_s24 = sadd.s32 1, %s618_s21   ;;  %s135_s25 = sadd.s32 1, %s614_s20 }
   0x5   : > { %s132_s26 = ssub.s32 %s618_s21, %s680_s24  ;;  %p145_p0 = scmp.ne.s32.totalorder %s614_s20, %s610_s19 }
   0x6   : > { %p133_p1 = scmp.eq.s32.totalorder %s132_s26, 0  ;;  %p146_p2 = scmp.eq.s32.totalorder %s676_s22, 1 }
   0x7   : > { %p151_p3 = scmp.ne.s32.totalorder %s610_s19, %s606_s18  ;;  %p152_p4 = scmp.eq.s32.totalorder %s482_s23, 1 }
   0x8   : > { %s691_s27 = scalar_select %p133_p1, %s614_s20, %s135_s25  }
   0x9   : > { %p693_p5 = por %p146_p2, %p145_p0  ;;  %p697_p6 = por %p152_p4, %p151_p3 }
   0xa   : > { %p485_p7 = scmp.ge.s32.totalorder %s618_s21, 1  ;;  %p190_p8 = scmp.lt.s32.totalorder %s618_s21, 3 }
   0xc   : > { %p191_p9 = pnand %p485_p7, %p190_p8 }
   0xd   : > { %p218_p10 = scmp.lt.s32.totalorder (!%p191_p9), %s676_s22, 1  ;;  %s215_s23 = sand.u32 (!%p191_p9), 1, %s610_s19  }
   0xe   : > { %194 = sbr.rel (%p191_p9) target bundleno = 712 (0x2c8), region = 40  ;;  %s486_s25 = sshll.u32 (!%p191_p9), %s215_s23, 3 }
   0xf   : > { %s498_s26 = sshll.u32 (!%p191_p9), %s676_s22, 7  ;;  %s409_s10 = scalar_lea.sflag (!%p191_p9), [#allocation3], %s215_s23 }
  0x10   : > { %s624_s12 = smov (!%p191_p9), [#allocation2]  }
  0x11   : > { %s562_s13 = sshll.u32 (!%p191_p9), %s624_s12, 4  ;;  %s563_s13 = int_to_ptr.vmem [resolvable:$false] %s562_s13 }
  0x13   : > { %s219_s30 = scalar_select %p218_p10, %s676_s22, 1  ;;  %vm227_vm0 = vcmask 1043456   ;;  %v620_v5 = vmov 0.0   ;;  %vm621_vm1 = vmmov 0   ;;  %v234_v8 = vld [vmem:[%s758_s1] sm:$0xff]  ;;  %vm236_vm2 = vcmask 31744  }
  0x14   : > { %503 = vmatprep.subr.mxu0 %v620_v5  ;;  %508 = vmatprep.subr.mxu1 %v620_v5  ;;  %v235_v9 = vld [vmem:[%s759_s2] sm:$0xff]  ;;  %vm316_vm3 = vcmask 64512   ;;  %v622_v15 = vmov 0   ;;  %v623_v24 = vmov 839922192   ;;  %v401_v26 = vlaneseq  ;;  %s564_s22 = scalar_lea.vmem %s563_s13, 256 }
  0x15   : > { %s497_s6 = sshll.u32 %s219_s30, 3  ;;  %505 = vmatprep.mubr.msk.f32.mxu0 %vm621_vm1, %v620_v5  ;;  %510 = vmatprep.mubr.msk.f32.mxu1 %vm621_vm1, %v620_v5  ;;  %v314_v14 = vld [vmem:[%s760_s3] sm:$0xf]  ;;  %v399_v25 = vunpack.c.l.s4 %v623_v24  ;;  %s217_s30 = scalar_lea.vmem [#allocation2], %s486_s25 }
  0x16   : > { %s222_s9 = scalar_lea.vmem %s757_s0, %s497_s6  ;;  %556 = vset.pattern.permute.xlu0 %v622_v15  ;;  %v315_v16 = vld [vmem:[%s761_s4] sm:$0xf]  ;;  %v402_v28 = vshrl.u32 %v401_v26, 7  ;;  %s423_s6 = sshll.u32 %s217_s30, 4  ;;  %s424_s6 = int_to_ptr.vmem [resolvable:$true] %s423_s6 }
  0x17   : > { %v223_v0 = vld [vmem:[%s222_s9] sm:$0xff]  ;;  %v400_v27 = vunpack.c.0.s8 %v399_v25  ;;  %s421_s9 = scalar_lea.hbm %s762_s5, %s498_s26  ;;  %s558_s11 = scalar_lea.vmem %s424_s6, 128 }
  0x18   : > { %v225_v1 = vcombine.high %v223_v0, %v223_v0  ;;  %v228_v2 = vsel %vm227_vm0, %v223_v0, 0.0  ;;  %p559_p11 = scmp.ne.s32.totalorder %s424_s6, %s558_s11  ;;  %p565_p0 = scmp.lt.s32.totalorder %s424_s6, %s563_s13 }
  0x19   : > { %v403_v29 = vsub.s32 %v400_v27, %v402_v28  ;;  %p566_p1 = scmp.lt.s32.totalorder %s564_s22, %s558_s11 }
  0x1a   : > { %v229_v3 = vsel %vm227_vm0, %v225_v1, 0.0  ;;  %p560_p12 = pnand %p559_p11, %p693_p5 }
  0x1b   : > { %v230_v4 = vadd.f32 %v229_v3, %v228_v2  ;;  %p567_p2 = por %p566_p1, %p565_p0 }
  0x1c   : > { %p561_p13 = pneg %p560_p12 }
  0x1d   : > { %231 = vadd.xlane.f32.xlu0 %v230_v4 }
  0x1e   : > { %p568_p3 = pnand %p567_p2, %p561_p13 }
  0xa6   : > { %v232_v6 = vpop.xlane.xlu0 %231 }
  0xa7   : > { %v233_v7 = vmul.f32 0.00390625, %v232_v6 }
  0xa9   : > { %504 = vmatpush3.msk.msra.mxu0 %vm227_vm0, %v233_v7 }
  0xaa   : > { %506 = vmatmul.mubr.msk.f32.vlgmr.msra.gmra.mxu0 %vm236_vm2, %v234_v8 }
 0x16a   : > { %v309_v10 = vpop.f32.mrf.mxu0 }
 0x16b   : > { %v310_v11 = vadd.f32 %v309_v10, %v235_v9 }
 0x16c   : > { %v507_v12 = vpop.f32.mrf.mxu0 }
 0x16d   : > { %v313_v13 = vmax.f32 %v310_v11, 0.0 }
 0x16f   : > { %509 = vmatpush3.msra.mxu1 %v313_v13 }
 0x170   : > { %511 = vmatmul.mubr.msk.f32.vlgmr.msra.gmra.mxu1 %vm316_vm3, %v314_v14 }
 0x230   : > { %v386_v17 = vpop.f32.mrf.mxu1 }
 0x231   : > { %v387_v18 = vadd.f32 %v386_v17, %v315_v16 }
 0x232   : > { %v512_v19 = vpop.f32.mrf.mxu1 }
 0x233   : > { %v390_v20 = vadd.f32 3.0, %v387_v18 }
 0x235   : > { %v391_v21 = vmax.f32 %v390_v20, 0.0 }
 0x237   : > { %v392_v22 = vmin.f32 %v391_v21, 6.0 }
 0x239   : > { %v393_v23 = vmul.f32 0.16666667, %v392_v22 }
 0x23b   : > { %396 = vperm.xlu0 %556, %v393_v23  }
 0x2b6   : > { %v397_v30 = vpop.permute.xlu0 %396 }
 0x2b7   : > { %v404_v31 = vrot.slane %v397_v30, %v403_v29 }
 0x2b9   : > { %v406_v32 = vmul.f32 %v404_v31, %v223_v0 }
 0x2bb   : > { %407 = vst [vmem:[%s217_s30] sm:$0xff] %v406_v32 }
 0x2bc   : > { %571 = shalt.err (!%p568_p3)
}
 0x2bd   : > { %s572_s14 = scalar_lea.hbm %s421_s9, 128  ;;  %s576_s17 = scalar_lea.hbm %s762_s5, 256 }
 0x2be   : > { %p573_p4 = scmp.ne.s32.totalorder %s421_s9, %s572_s14  ;;  %p577_p9 = scmp.lt.s32.totalorder %s421_s9, %s762_s5 }
 0x2bf   : > { %p578_p10 = scmp.lt.s32.totalorder %s576_s17, %s572_s14 }
 0x2c0   : > { %p574_p7 = pnand %p573_p4, %p693_p5 }
 0x2c1   : > { %p579_p11 = por %p578_p10, %p577_p9 }
 0x2c2   : > { %p575_p8 = pneg %p574_p7 }
 0x2c4   : > { %p580_p12 = pnand %p579_p11, %p575_p8 }
 0x2c6   : > { %583 = shalt.err (!%p580_p12)
}
 0x2c7   : > { %513 = dma.vmem_to_hbm [thread:$0]  (%p693_p5), %s424_s6, 128, %s421_s9, %s409_s10  }
 0x2c8 PF: > { %p519_p13 = scmp.ge.s32.totalorder %s618_s21, 2  ;;  %s435_s26 = sand.u32 1, %s606_s18  }
 0x2c9   : > { %s436_s30 = scalar_lea.sflag [#allocation3], %s435_s26 }
 0x2ca   : > { %p516_p0 = pnand %p519_p13, %p697_p6 }
 0x2cc   : > { %p517_p1 = pneg %p516_p0 }
 0x2ce   : > { %601 = dma.done.wait (%p517_p1), %s436_s30, 128  }
 0x2cf   : > { %603 = vsyncadd (%p517_p1), %s436_s30, 4294967168  ;;  %p15_p2 = scmp.ge.s32.totalorder %s680_s24, 4   ;;  %s765_s18 = smov %s610_s19 }
 0x2d0   : > { %s766_s19 = smov %s614_s20  ;;  %s767_s20 = smov %s691_s27 }
 0x2d1   : > { %s768_s21 = smov %s680_s24  ;;  %17 = sbr.rel (!%p15_p2) target bundleno = 3 (0x3), region = 75 }
 0x2d6   :  { %441 = vsyncpa [#allocation3], 1 }
 0x2d7   :  { %443 = vsyncpa [#allocation3 + $0x1], 1 }

</bundles_post_ra>
